<compile_context>
chip_gen: v6e
topology: v6e:2x2x1
jax: 0.10.0
libtpu: 0.0.40
codegen_flags: <defaults>
</compile_context>

<pallas_src>
import math
import functools

import jax
import jax.numpy as jnp
from jax.experimental import pallas as pl
from jax.experimental.pallas import tpu as pltpu

_MIB = 1024 * 1024


def _round_up(n, m):
    return (n + m - 1) // m * m


def _detect_pipeline_mode():
    try:
        pl.BlockSpec((8, 128), lambda i: (0, 0), pipeline_mode=pl.Buffered(1))
        return True
    except Exception:
        return False


_HAS_PIPELINE_MODE = _detect_pipeline_mode()


def _resident_spec(shape):
    """Grid-invariant operand (constant index_map). Single-buffered when the
    running JAX supports pipeline_mode — double-buffering a grid-invariant
    block only wastes VMEM."""
    index_map = lambda *_: (0,) * len(shape)
    if _HAS_PIPELINE_MODE:
        return pl.BlockSpec(shape, index_map, pipeline_mode=pl.Buffered(1))
    return pl.BlockSpec(shape, index_map)


def _vmem_budget_bytes():
    """Generation-aware VMEM working-set budget (headroom left for compiler
    internal scratch / semaphores)."""
    try:
        cap = int(pltpu.get_tpu_info().vmem_capacity_bytes)
    except Exception:
        cap = 64 * _MIB                    # conservative: assume v7x-sized VMEM
    if cap >= 128 * _MIB:                  # v5e / v6e: 128 MiB physical
        return 96 * _MIB
    return max(32 * _MIB, cap * 7 // 10)   # v7x: 64 MiB physical -> ~44 MiB


def _gelu(y, approximate):
    if approximate:
        # tanh GELU goes to the EUP (separate VLIW slot, overlaps the MXU).
        return jax.nn.gelu(y, approximate=True)
    # Exact erf GELU (torch nn.GELU default).
    return 0.5 * y * (1.0 + jax.lax.erf(y * (1.0 / math.sqrt(2.0))))


def _pick_row_tile(N, tm_req, min_rows, fits):
    # Requested tile, kept a multiple of the native sublane tile for the
    # compute dtype (16 rows bf16 / 8 rows f32).
    tm_eff = max(min_rows,
                 _round_up(min(tm_req, _round_up(max(N, 1), min_rows)), min_rows))
    # Keep >= 2 grid steps when the problem allows it so the "parallel" row
    # axis can be sharded across v7x's 2 TensorCores.
    if N >= 2 * min_rows:
        tm_eff = min(tm_eff, _round_up((N + 1) // 2, min_rows))
    # Shrink until the double-buffered working set fits the VMEM budget.
    while tm_eff > min_rows and not fits(tm_eff):
        tm_eff = max(min_rows, _round_up(tm_eff // 2, min_rows))
    return tm_eff


def _pick_divisor_tile(dim, cap):
    """Largest multiple of 128 dividing `dim` (itself a multiple of 128), <= cap."""
    best = 128
    t = 128
    while t <= min(dim, cap):
        if dim % t == 0:
            best = t
        t += 128
    return best


# --------------------------------------------------------------------------- #
# Fused whole-MLP kernel (all layers in one pallas_call, weights resident).
# --------------------------------------------------------------------------- #
def _make_fused_mlp_kernel(num_layers, compute_dtype, approximate_gelu):
    def kernel(*refs):
        x_ref = refs[0]
        o_ref = refs[-1]
        h = x_ref[...]                              # (tm, Kp0), compute dtype
        for layer in range(num_layers):
            w = refs[1 + 2 * layer][...]            # (Kp, Mp), compute dtype
            b = refs[2 + 2 * layer][...]            # (1, Mp), f32
            y = jnp.dot(h.astype(w.dtype), w,
                        preferred_element_type=jnp.float32) + b
            g = _gelu(y, approximate_gelu)          # f32
            if layer + 1 < num_layers:
                h = g.astype(compute_dtype)         # halve live bytes between layers
            else:
                h = g
        o_ref[...] = h.astype(o_ref.dtype)

    return kernel


def _fused_mlp_call(x_p, padded, dims, tm_eff, out_dtype, compute_dtype,
                    approximate_gelu, budget):
    Np, Kp0 = x_p.shape
    Mp_last = dims[-1][1]
    num_layers = len(padded)
    cd = jnp.dtype(compute_dtype).itemsize
    osz = jnp.dtype(out_dtype).itemsize

    in_specs = [pl.BlockSpec((tm_eff, Kp0), lambda i: (i, 0))]
    operands = [x_p]
    for (w_p, b_p), (Kp, Mp) in zip(padded, dims):
        in_specs.append(_resident_spec((Kp, Mp)))   # weights: grid-invariant
        in_specs.append(_resident_spec((1, Mp)))    # bias: grid-invariant
        operands.extend([w_p, b_p])

    cost = pl.CostEstimate(
        flops=2 * Np * sum(Kp * Mp for Kp, Mp in dims),
        transcendentals=Np * sum(Mp for _, Mp in dims),
        bytes_accessed=(Np * Kp0 * cd + Np * Mp_last * osz
                        + sum(Kp * Mp * cd + Mp * 4 for Kp, Mp in dims)),
    )

    return pl.pallas_call(
        _make_fused_mlp_kernel(num_layers, compute_dtype, approximate_gelu),
        out_shape=jax.ShapeDtypeStruct((Np, Mp_last), out_dtype),
        grid_spec=pltpu.PrefetchScalarGridSpec(
            num_scalar_prefetch=0,
            grid=(Np // tm_eff,),
            in_specs=in_specs,
            out_specs=pl.BlockSpec((tm_eff, Mp_last), lambda i: (i, 0)),
        ),
        compiler_params=pltpu.CompilerParams(
            dimension_semantics=("parallel",),       # megacore-shard rows
            vmem_limit_bytes=int(budget),            # match the budget used above
        ),
        cost_estimate=cost,
    )(*operands)


# --------------------------------------------------------------------------- #
# Fallback: per-layer K/N-tiled linear+GELU (for weights too big to be resident)
# --------------------------------------------------------------------------- #
def _linear_gelu_kernel(x_ref, w_ref, b_ref, o_ref, acc_ref, *, approximate_gelu):
    @pl.when(pl.program_id(2) == 0)
    def _():
        acc_ref[...] = jnp.zeros_like(acc_ref)

    acc_ref[...] += jnp.dot(x_ref[...], w_ref[...],
                            preferred_element_type=jnp.float32)

    @pl.when(pl.program_id(2) == pl.num_programs(2) - 1)
    def _():
        y = acc_ref[...] + b_ref[...]
        o_ref[...] = _gelu(y, approximate_gelu).astype(o_ref.dtype)


def _tiled_linear_gelu(x_p, w_p, b_p, *, out_dtype, approximate_gelu, tm, budget):
    Np, Kp = x_p.shape
    Mp = w_p.shape[1]
    tk = _pick_divisor_tile(Kp, 512)
    tn = _pick_divisor_tile(Mp, 512)
    cd = x_p.dtype.itemsize
    osz = jnp.dtype(out_dtype).itemsize

    cost = pl.CostEstimate(
        flops=2 * Np * Kp * Mp,
        transcendentals=Np * Mp,
        bytes_accessed=Np * Kp * cd + Kp * Mp * w_p.dtype.itemsize + Mp * 4
                       + Np * Mp * osz,
    )

    return pl.pallas_call(
        functools.partial(_linear_gelu_kernel, approximate_gelu=approximate_gelu),
        out_shape=jax.ShapeDtypeStruct((Np, Mp), out_dtype),
        grid_spec=pltpu.PrefetchScalarGridSpec(
            num_scalar_prefetch=0,
            grid=(Np // tm, Mp // tn, Kp // tk),
            in_specs=[pl.BlockSpec((tm, tk), lambda i, j, k: (i, k)),
                      pl.BlockSpec((tk, tn), lambda i, j, k: (k, j)),
                      pl.BlockSpec((1, tn), lambda i, j, k: (0, j))],
            out_specs=pl.BlockSpec((tm, tn), lambda i, j, k: (i, j)),
            scratch_shapes=[pltpu.VMEM((tm, tn), jnp.float32)],
        ),
        compiler_params=pltpu.CompilerParams(
            dimension_semantics=("parallel", "parallel", "arbitrary"),
            vmem_limit_bytes=int(max(budget, 16 * _MIB)),
        ),
        cost_estimate=cost,
    )(x_p, w_p, b_p)


# --------------------------------------------------------------------------- #
# Dispatcher: pad to lane-dense 128-multiples, pick tiles, choose path.
# --------------------------------------------------------------------------- #
def _mlp_pallas(x2d, params, *, tm, compute_dtype, out_dtype, approximate_gelu,
                force_tiled, vmem_budget_bytes):
    N, F0 = x2d.shape
    num_layers = len(params)
    cd = jnp.dtype(compute_dtype).itemsize
    osz = jnp.dtype(out_dtype).itemsize
    min_rows = 16 if cd < 4 else 8

    budget = (_vmem_budget_bytes() if vmem_budget_bytes is None
              else int(vmem_budget_bytes))

    # --- pad feature dims to multiples of 128 (lane-dense, exact zero pad) ----
    Kp0 = _round_up(F0, 128)
    padded, dims = [], []
    for (w, b) in params:
        K, M = w.shape
        Kp, Mp = _round_up(K, 128), _round_up(M, 128)
        w_p = jnp.zeros((Kp, Mp), compute_dtype).at[:K, :M].set(
            w.astype(compute_dtype))
        b_p = jnp.zeros((1, Mp), jnp.float32).at[:, :M].set(
            b.reshape(1, M).astype(jnp.float32))
        padded.append((w_p, b_p))
        dims.append((Kp, Mp))
    Mp_last = dims[-1][1]
    M_last = params[-1][0].shape[1]

    # --- VMEM estimate for the fused path -------------------------------------
    wbuf = 1 if _HAS_PIPELINE_MODE else 2          # weights single-buffered if possible
    w_resident = wbuf * sum(Kp * Mp * cd + Mp * 4 for Kp, Mp in dims)
    act_row_bytes = 4 * max(Mp for _, Mp in dims)  # largest f32 intermediate, once

    def fused_fits(t):
        est = 2 * t * Kp0 * cd                     # double-buffered input tile
        est += 2 * t * Mp_last * osz               # double-buffered output tile
        est += w_resident                          # resident weights + biases
        est += t * act_row_bytes                   # in-kernel intermediates
        return est <= budget

    use_tiled = force_tiled or not fused_fits(min_rows)

    if not use_tiled:
        tm_eff = _pick_row_tile(N, tm, min_rows, fused_fits)
        Np = _round_up(N, tm_eff)
        x_p = jnp.zeros((Np, Kp0), compute_dtype).at[:N, :F0].set(
            x2d.astype(compute_dtype))
        out = _fused_mlp_call(x_p, padded, dims, tm_eff, out_dtype,
                              compute_dtype, approximate_gelu, budget)
        return out[:N, :M_last]

    # ---- fallback: per-layer K/N-tiled linear+GELU ---------------------------
    tm_eff = _pick_row_tile(N, tm, min_rows, lambda t: True)
    Np = _round_up(N, tm_eff)
    h = jnp.zeros((Np, Kp0), compute_dtype).at[:N, :F0].set(
        x2d.astype(compute_dtype))
    for layer, ((w_p, b_p), (Kp, Mp)) in enumerate(zip(padded, dims)):
        layer_out_dtype = out_dtype if layer == num_layers - 1 else compute_dtype
        h = _tiled_linear_gelu(h, w_p, b_p, out_dtype=layer_out_dtype,
                               approximate_gelu=approximate_gelu,
                               tm=tm_eff, budget=budget)
    return h[:N, :M_last]


def init_mlp_params(key, features):
    """Deterministic init mimicking nn.Linear's default (uniform +/- 1/sqrt(fan_in))."""
    params = []
    for i in range(len(features) - 1):
        fan_in, fan_out = features[i], features[i + 1]
        key, kw, kb = jax.random.split(key, 3)
        bound = 1.0 / math.sqrt(fan_in)
        w = jax.random.uniform(kw, (fan_in, fan_out), jnp.float32, -bound, bound)
        b = jax.random.uniform(kb, (fan_out,), jnp.float32, -bound, bound)
        params.append((w, b))
    return params


@functools.partial(jax.jit, static_argnames=("tm", "compute_dtype", "out_dtype",
                                             "approximate_gelu", "force_tiled",
                                             "vmem_budget_bytes"))
def mlp_forward(x, params, *, tm=256, compute_dtype=jnp.bfloat16, out_dtype=None,
                approximate_gelu=False, force_tiled=False, vmem_budget_bytes=None):
    """x: (B, S, F0) -> (B, S, F_last).  Dropout(p=0.0) between layers is identity."""
    B, S, F0 = x.shape
    out_dt = x.dtype if out_dtype is None else jnp.dtype(out_dtype)
    y = _mlp_pallas(x.reshape(B * S, F0), params, tm=tm,
                    compute_dtype=compute_dtype, out_dtype=out_dt,
                    approximate_gelu=approximate_gelu, force_tiled=force_tiled,
                    vmem_budget_bytes=vmem_budget_bytes)
    # TODO(synk): dropout with drop > 0.0 not implemented (module default drop=0.0).
    return y.reshape(B, S, -1)


if __name__ == "__main__":
    key = jax.random.PRNGKey(0)
    kx, kp = jax.random.split(key)

    batch, seq = 2, 8
    features = [32, 64, 32]          # features list passed to MLP(__init__)

    x = jax.random.normal(kx, (batch, seq, features[0]), jnp.float32)
    params = init_mlp_params(kp, features)

    # plain-JAX reference (exact erf GELU, f32)
    ref = x.reshape(batch * seq, features[0])
    for (w, b) in params:
        y = ref @ w + b
        ref = 0.5 * y * (1.0 + jax.lax.erf(y / math.sqrt(2.0)))
    ref = ref.reshape(batch, seq, -1)

    # 1) Default path: fused kernel, bf16 compute with f32 accumulation.
    out_bf16 = mlp_forward(x, params)
    jax.block_until_ready(out_bf16)
    assert out_bf16.shape == ref.shape
    assert jnp.allclose(out_bf16, ref, atol=5e-2, rtol=5e-2)

    # 2) f32 parity path (matches the torch module tightly).
    out_f32 = mlp_forward(x, params, compute_dtype=jnp.float32)
    jax.block_until_ready(out_f32)
    assert jnp.allclose(out_f32, ref, atol=1e-5, rtol=1e-5)

    # 3) Exercise the K/N-tiled large-weight fallback path explicitly.
    out_tiled = mlp_forward(x, params, compute_dtype=jnp.float32, force_tiled=True)
    jax.block_until_ready(out_tiled)
    assert jnp.allclose(out_tiled, ref, atol=1e-4, rtol=1e-4)

    print("KERNEL_OK")
</pallas_src>

<mosaic_0001>
module attributes {stable_mosaic.version = 11 : i64} {
  func.func @kernel(%arg0: i32, %arg1: memref<16x128xbf16, #tpu.memory_space<vmem>>, %arg2: memref<128x128xbf16, #tpu.memory_space<vmem>>, %arg3: memref<1x128xf32, #tpu.memory_space<vmem>>, %arg4: memref<128x128xbf16, #tpu.memory_space<vmem>>, %arg5: memref<1x128xf32, #tpu.memory_space<vmem>>, %arg6: memref<16x128xf32, #tpu.memory_space<vmem>>) attributes {dimension_semantics = [#tpu.dimension_semantics<parallel>], iteration_bounds = array<i64: 1>, scalar_prefetch = 0 : i64, scratch_operands = 0 : i64, tpu.core_type = #tpu.core_type<tc>, window_params = [{transform_indices = @transform_0, window_bounds = array<i64: 16, 128>}, {pipeline_mode = #tpu.pipeline_mode<synchronous>, transform_indices = @transform_1, window_bounds = array<i64: 128, 128>}, {pipeline_mode = #tpu.pipeline_mode<synchronous>, transform_indices = @transform_2, window_bounds = array<i64: 1, 128>}, {pipeline_mode = #tpu.pipeline_mode<synchronous>, transform_indices = @transform_3, window_bounds = array<i64: 128, 128>}, {pipeline_mode = #tpu.pipeline_mode<synchronous>, transform_indices = @transform_4, window_bounds = array<i64: 1, 128>}, {transform_indices = @transform_5, window_bounds = array<i64: 16, 128>}]} {
    %c0 = arith.constant 0 : index
    %c0_0 = arith.constant 0 : index
    %0 = vector.load %arg1[%c0, %c0_0] : memref<16x128xbf16, #tpu.memory_space<vmem>>, vector<16x128xbf16>
    %c0_1 = arith.constant 0 : index
    %c0_2 = arith.constant 0 : index
    %1 = vector.load %arg2[%c0_1, %c0_2] : memref<128x128xbf16, #tpu.memory_space<vmem>>, vector<128x128xbf16>
    %c0_3 = arith.constant 0 : index
    %c0_4 = arith.constant 0 : index
    %2 = vector.load %arg3[%c0_3, %c0_4] : memref<1x128xf32, #tpu.memory_space<vmem>>, vector<1x128xf32>
    %cst = arith.constant dense<0.000000e+00> : vector<16x128xf32>
    %3 = tpu.matmul %0, %1, %cst {dimension_numbers = #tpu.dot_dimension_numbers<[1], [0], [0], [1], [0, 0, 1, 1], [], []>} : vector<16x128xbf16>, vector<128x128xbf16>, vector<16x128xf32> -> vector<16x128xf32>
    %4 = vector.broadcast %2 : vector<1x128xf32> to vector<16x128xf32>
    %5 = arith.addf %3, %4 : vector<16x128xf32>
    %cst_5 = arith.constant 5.000000e-01 : f32
    %6 = vector.broadcast %cst_5 : f32 to vector<16x128xf32>
    %7 = arith.mulf %6, %5 : vector<16x128xf32>
    %cst_6 = arith.constant 0.707106769 : f32
    %8 = vector.broadcast %cst_6 : f32 to vector<16x128xf32>
    %9 = arith.mulf %5, %8 : vector<16x128xf32>
    %10 = math.erf %9 : vector<16x128xf32>
    %cst_7 = arith.constant 1.000000e+00 : f32
    %11 = vector.broadcast %cst_7 : f32 to vector<16x128xf32>
    %12 = arith.addf %11, %10 : vector<16x128xf32>
    %13 = arith.mulf %7, %12 : vector<16x128xf32>
    %14 = arith.truncf %13 : vector<16x128xf32> to vector<16x128xbf16>
    %c0_8 = arith.constant 0 : index
    %c0_9 = arith.constant 0 : index
    %15 = vector.load %arg4[%c0_8, %c0_9] : memref<128x128xbf16, #tpu.memory_space<vmem>>, vector<128x128xbf16>
    %c0_10 = arith.constant 0 : index
    %c0_11 = arith.constant 0 : index
    %16 = vector.load %arg5[%c0_10, %c0_11] : memref<1x128xf32, #tpu.memory_space<vmem>>, vector<1x128xf32>
    %cst_12 = arith.constant dense<0.000000e+00> : vector<16x128xf32>
    %17 = tpu.matmul %14, %15, %cst_12 {dimension_numbers = #tpu.dot_dimension_numbers<[1], [0], [0], [1], [0, 0, 1, 1], [], []>} : vector<16x128xbf16>, vector<128x128xbf16>, vector<16x128xf32> -> vector<16x128xf32>
    %18 = vector.broadcast %16 : vector<1x128xf32> to vector<16x128xf32>
    %19 = arith.addf %17, %18 : vector<16x128xf32>
    %cst_13 = arith.constant 5.000000e-01 : f32
    %20 = vector.broadcast %cst_13 : f32 to vector<16x128xf32>
    %21 = arith.mulf %20, %19 : vector<16x128xf32>
    %cst_14 = arith.constant 0.707106769 : f32
    %22 = vector.broadcast %cst_14 : f32 to vector<16x128xf32>
    %23 = arith.mulf %19, %22 : vector<16x128xf32>
    %24 = math.erf %23 : vector<16x128xf32>
    %cst_15 = arith.constant 1.000000e+00 : f32
    %25 = vector.broadcast %cst_15 : f32 to vector<16x128xf32>
    %26 = arith.addf %25, %24 : vector<16x128xf32>
    %27 = arith.mulf %21, %26 : vector<16x128xf32>
    %c0_16 = arith.constant 0 : index
    %c0_17 = arith.constant 0 : index
    %28 = vector.load %arg6[%c0_16, %c0_17] : memref<16x128xf32, #tpu.memory_space<vmem>>, vector<16x128xf32>
    tpu.vector_store %arg6[%c0_16, %c0_17], %27 {strides = array<i32>} : memref<16x128xf32, #tpu.memory_space<vmem>>, vector<16x128xf32>,
    return
  }
  func.func @transform_0(%arg0: i32) -> (i32, i32) {
    %c0_i32 = arith.constant 0 : i32
    %c0_i32_0 = arith.constant 0 : i32
    return %arg0, %c0_i32 : i32, i32
  }
  func.func @transform_1(%arg0: i32) -> (i32, i32) {
    %c0_i32 = arith.constant 0 : i32
    %c0_i32_0 = arith.constant 0 : i32
    %c0_i32_1 = arith.constant 0 : i32
    return %c0_i32, %c0_i32_0 : i32, i32
  }
  func.func @transform_2(%arg0: i32) -> (i32, i32) {
    %c0_i32 = arith.constant 0 : i32
    %c0_i32_0 = arith.constant 0 : i32
    %c0_i32_1 = arith.constant 0 : i32
    return %c0_i32, %c0_i32_0 : i32, i32
  }
  func.func @transform_3(%arg0: i32) -> (i32, i32) {
    %c0_i32 = arith.constant 0 : i32
    %c0_i32_0 = arith.constant 0 : i32
    %c0_i32_1 = arith.constant 0 : i32
    return %c0_i32, %c0_i32_0 : i32, i32
  }
  func.func @transform_4(%arg0: i32) -> (i32, i32) {
    %c0_i32 = arith.constant 0 : i32
    %c0_i32_0 = arith.constant 0 : i32
    %c0_i32_1 = arith.constant 0 : i32
    return %c0_i32, %c0_i32_0 : i32, i32
  }
  func.func @transform_5(%arg0: i32) -> (i32, i32) {
    %c0_i32 = arith.constant 0 : i32
    %c0_i32_0 = arith.constant 0 : i32
    return %arg0, %c0_i32 : i32, i32
  }
}

</mosaic_0001>

<bundles_post_ra>
// kernel: mlp_forward.1
= control target key start
LH: loop header
LB: loop body
LE: loop exit
PB: predicated region body
PF: predicated region fallthrough
CT: control target
= control target key end

     0   :  { %v384_v0 = vmov 0.0   ;;  %vm385_vm0 = vmmov 0   ;;  %s479_s1 = inlined_call_operand.vmem [shape: bf16[128,128], index: 1, kind: input, shape index: {}]   ;;  %s480_s3 = inlined_call_operand.vmem [shape: bf16[128,128], index: 3, kind: input, shape index: {}]   ;;  %s481_s0 = inlined_call_operand.vmem [shape: bf16[16,128], index: 0, kind: input, shape index: {}]   ;;  %s482_s2 = inlined_call_operand.vmem [shape: f32[1,128], index: 2, kind: input, shape index: {}]   ;;  %s483_s4 = inlined_call_operand.vmem [shape: f32[1,128], index: 4, kind: input, shape index: {}]   ;;  %s484_s5 = inlined_call_operand.vmem [shape: f32[16,128], index: 5, kind: output, shape index: {}]  }
   0x1   :  { %317 = vmatprep.subr.bf16.mxu0 %v384_v0  ;;  %v359_v1 = vld [vmem:[%s479_s1 + $0x38] sm:$0xff]   ;;  %333 = vmatprep.mubr.msk.bf16.mxu0 %vm385_vm0, %v384_v0  ;;  %v360_v2 = vld [vmem:[%s479_s1 + $0x30] sm:$0xff]   ;;  %v361_v3 = vld [vmem:[%s479_s1 + $0x28] sm:$0xff]  }
   0x2   :  { %337 = vmatprep.subr.bf16.mxu1 %v384_v0  ;;  %353 = vmatprep.mubr.msk.bf16.mxu1 %vm385_vm0, %v384_v0  ;;  %v368_v4 = vld [vmem:[%s480_s3 + $0x38] sm:$0xff]   ;;  %v362_v5 = vld [vmem:[%s479_s1 + $0x20] sm:$0xff]   ;;  %v364_v7 = vld [vmem:[%s479_s1 + $0x10] sm:$0xff]  }
   0x3   :  { %318 = vmatpush3.bf16.msra.mxu0 %v359_v1  ;;  %338 = vmatpush3.bf16.msra.mxu1 %v368_v4  ;;  %v363_v6 = vld [vmem:[%s479_s1 + $0x18] sm:$0xff]   ;;  %v365_v8 = vld [vmem:[%s479_s1 + $0x8] sm:$0xff]   ;;  %v366_v9 = vld [vmem:[%s479_s1] sm:$0xff]  }
   0x4   :  { %319 = vmatprep.subr.bf16.mxu0 %v384_v0  ;;  %339 = vmatprep.subr.bf16.mxu1 %v384_v0  ;;  %v367_v10 = vld [vmem:[%s481_s0] sm:$0xff]   ;;  %v369_v11 = vld [vmem:[%s480_s3 + $0x30] sm:$0xff]   ;;  %v370_v12 = vld [vmem:[%s480_s3 + $0x28] sm:$0xff]  }
   0x5   :  { %v371_v13 = vld [vmem:[%s480_s3 + $0x20] sm:$0xff]   ;;  %v372_v14 = vld [vmem:[%s480_s3 + $0x18] sm:$0xff]   ;;  %v373_v15 = vld [vmem:[%s480_s3 + $0x10] sm:$0xff]  }
   0x6   :  { %v374_v16 = vld [vmem:[%s480_s3 + $0x8] sm:$0xff]   ;;  %v375_v17 = vld [vmem:[%s480_s3] sm:$0xff]  }
   0x7   :  { %320 = vmatpush3.bf16.msra.mxu0 %v360_v2  ;;  %340 = vmatpush3.bf16.msra.mxu1 %v369_v11  ;;  %v280_v18 = vld [vmem:[%s482_s2] ss:$0 sm:$0xff] }
   0x8   :  { %321 = vmatprep.subr.bf16.mxu0 %v384_v0  ;;  %341 = vmatprep.subr.bf16.mxu1 %v384_v0  ;;  %v290_v36 = vld [vmem:[%s483_s4] ss:$0 sm:$0xff] }
   0xb   :  { %322 = vmatpush3.bf16.msra.mxu0 %v361_v3  ;;  %342 = vmatpush3.bf16.msra.mxu1 %v370_v12 }
   0xc   :  { %323 = vmatprep.subr.bf16.mxu0 %v384_v0  ;;  %343 = vmatprep.subr.bf16.mxu1 %v384_v0 }
   0xf   :  { %324 = vmatpush3.bf16.msra.mxu0 %v362_v5  ;;  %344 = vmatpush3.bf16.msra.mxu1 %v371_v13 }
  0x10   :  { %325 = vmatprep.subr.bf16.mxu0 %v384_v0  ;;  %345 = vmatprep.subr.bf16.mxu1 %v384_v0 }
  0x13   :  { %326 = vmatpush3.bf16.msra.mxu0 %v363_v6  ;;  %346 = vmatpush3.bf16.msra.mxu1 %v372_v14 }
  0x14   :  { %327 = vmatprep.subr.bf16.mxu0 %v384_v0  ;;  %347 = vmatprep.subr.bf16.mxu1 %v384_v0 }
  0x17   :  { %328 = vmatpush3.bf16.msra.mxu0 %v364_v7  ;;  %348 = vmatpush3.bf16.msra.mxu1 %v373_v15 }
  0x18   :  { %329 = vmatprep.subr.bf16.mxu0 %v384_v0  ;;  %349 = vmatprep.subr.bf16.mxu1 %v384_v0 }
  0x1b   :  { %330 = vmatpush3.bf16.msra.mxu0 %v365_v8  ;;  %350 = vmatpush3.bf16.msra.mxu1 %v374_v16 }
  0x1c   :  { %331 = vmatprep.subr.bf16.mxu0 %v384_v0  ;;  %351 = vmatprep.subr.bf16.mxu1 %v384_v0 }
  0x1f   :  { %332 = vmatpush3.bf16.msra.mxu0 %v366_v9  ;;  %352 = vmatpush3.bf16.msra.mxu1 %v375_v17 }
  0x22   :  { %334 = vmatmul.mubr.bf16.vlgmr.msra.gmra.mxu0 %v367_v10 }
  0xe2   :  { %v134_v19 = vpop.f32.mrf.mxu0 }
  0xe3   :  { %v135_v20 = vadd.f32 %v280_v18, %v134_v19 }
  0xe4   :  { %v335_v21 = vpop.f32.mrf.mxu0 }
  0xe5   :  { %v143_v22 = vmul.f32 0.70710677, %v135_v20  ;;  %v141_v30 = vmul.f32 0.5, %v135_v20 }
  0xe6   :  { %v137_v23 = vpop.f32.mrf.mxu0 }
  0xe7   :  { %376 = verf.f32 %v143_v22  ;;  %v138_v24 = vadd.f32 %v280_v18, %v137_v23 }
  0xe8   :  { %v336_v25 = vpop.f32.mrf.mxu0 }
  0xe9   :  { %v144_v26 = vmul.f32 0.70710677, %v138_v24  ;;  %v142_v31 = vmul.f32 0.5, %v138_v24 }
  0xeb   :  { %378 = verf.f32 %v144_v26 }
  0xf4   :  { %v377_v27 = vpop.eup %376 }
  0xf5   :  { %v147_v28 = vadd.f32 1.0, %v377_v27 }
  0xf7   :  { %v149_v33 = vmul.f32 %v147_v28, %v141_v30 }
  0xf8   :  { %v379_v29 = vpop.eup %378 }
  0xf9   :  { %v148_v32 = vadd.f32 1.0, %v379_v29 }
  0xfb   :  { %v150_v34 = vmul.f32 %v148_v32, %v142_v31 }
  0xfd   :  { %v151_v35 = vpack.c.bf16 %v150_v34, %v149_v33 }
  0xff   :  { %354 = vmatmul.mubr.bf16.vlgmr.msra.gmra.mxu1 %v151_v35 }
 0x1bf   :  { %v257_v37 = vpop.f32.mrf.mxu1 }
 0x1c0   :  { %v258_v38 = vadd.f32 %v290_v36, %v257_v37 }
 0x1c1   :  { %v355_v39 = vpop.f32.mrf.mxu1 }
 0x1c2   :  { %v266_v40 = vmul.f32 0.70710677, %v258_v38  ;;  %v264_v46 = vmul.f32 0.5, %v258_v38 }
 0x1c3   :  { %v260_v41 = vpop.f32.mrf.mxu1 }
 0x1c4   :  { %380 = verf.f32 %v266_v40  ;;  %v261_v42 = vadd.f32 %v290_v36, %v260_v41 }
 0x1c5   :  { %v356_v43 = vpop.f32.mrf.mxu1 }
 0x1c6   :  { %v267_v44 = vmul.f32 0.70710677, %v261_v42  ;;  %v265_v50 = vmul.f32 0.5, %v261_v42 }
 0x1c8   :  { %382 = verf.f32 %v267_v44 }
 0x1d1   :  { %v381_v45 = vpop.eup %380 }
 0x1d2   :  { %v270_v47 = vadd.f32 1.0, %v381_v45 }
 0x1d4   :  { %v272_v48 = vmul.f32 %v270_v47, %v264_v46 }
 0x1d5   :  { %v383_v49 = vpop.eup %382 }
 0x1d6   :  { %274 = vst [vmem:[%s484_s5] sm:$0xff] %v272_v48  ;;  %v271_v51 = vadd.f32 1.0, %v383_v49 }
 0x1d8   :  { %v273_v52 = vmul.f32 %v271_v51, %v265_v50 }
 0x1da   :  { %275 = vst [vmem:[%s484_s5 + $0x8] sm:$0xff] %v273_v52 }

</bundles_post_ra>
